<compile_context>
chip_gen: v5e
topology: v5e:2x2
jax: 0.10.0
libtpu: 0.0.40
codegen_flags: <defaults>
</compile_context>

<pallas_src>
import jax
import jax.numpy as jnp
from jax.experimental import pallas as pl
from jax.experimental.pallas import tpu as pltpu

_LANE = 128
_SUBLANE = 8
_MAX_HW_TILE = 4096                    # large baseline tile (kernel is HBM-bound)
_VMEM_TILE_BUDGET = 24 * 1024 * 1024   # double-buffered in+out tile budget
_VMEM_LIMIT_BYTES = 40 * 1024 * 1024   # raised scoped VMEM limit (fits v5e..v7x)
_VPU_CHANNEL_CUTOFF = 32               # below this channel count, bypass the MXU


def _round_up(x: int, m: int) -> int:
    return ((x + m - 1) // m) * m


def _mxu_kernel(x_ref, w_ref, o_ref):
    # x_ref: (C, T) activation tile; w_ref: (K, C) gamma-folded weight (VMEM,
    # constant block index -> resident); o_ref: (K, T) lane-dense output tile.
    # Precision pinned deliberately: DEFAULT = one bf16 MXU pass with f32
    # accumulation (HIGHEST would push the big stationary x tile 3-6x).
    o_ref[...] = jnp.dot(
        w_ref[...], x_ref[...],
        preferred_element_type=jnp.float32,
        precision=jax.lax.Precision.DEFAULT,
    ).astype(o_ref.dtype)


def _vpu_kernel(x_ref, w_ref, o_ref):
    # x_ref: (C, T) activation tile (VMEM); w_ref: (K, C) weight in SMEM;
    # o_ref: (K, T).  Tiny contraction -> unrolled scalar*row MACs on the VPU
    # (exact f32, no per-tile MXU push / result-FIFO drain latency).
    K, C = w_ref.shape
    x = x_ref[...]
    for k in range(K):
        acc = w_ref[k, 0] * x[0:1, :]
        for c in range(1, C):
            acc = acc + w_ref[k, c] * x[c:c + 1, :]
        o_ref[k:k + 1, :] = acc.astype(o_ref.dtype)


def _pick_hw_tile(hw: int, n: int, c: int, k: int, itemsize: int) -> int:
    """Largest lane-dense (multiple of 128) pixel tile that fits the VMEM
    budget, while guaranteeing >= 2 total grid steps (v7x has 2 TensorCores)."""
    hw128 = _round_up(hw, _LANE)
    k_rows = _round_up(k, _SUBLANE)
    per_col = 2 * itemsize * (c + k_rows)          # double-buffered in + out
    t = max(_LANE, (min(_MAX_HW_TILE, hw128) // _LANE) * _LANE)
    while t > _LANE and per_col * t > _VMEM_TILE_BUDGET:
        t -= _LANE
    # TODO(synk): if C ever grows large enough to force t below ~512, add a
    # C-reduction grid axis (innermost, "arbitrary") with an f32 VMEM
    # accumulator instead of shrinking the pixel tile further.
    while t > _LANE and n * (_round_up(hw, t) // t) < 2:
        t = max(_LANE, ((t // 2) // _LANE) * _LANE)
    return t


def linear_classifier_forward(x_nchw, weight_kc, gamma):
    """x_nchw: (N, C, H, W); weight_kc: (num_class, C). Returns (N, K, H, W)."""
    N, C, H, W = x_nchw.shape
    K = weight_kc.shape[0]
    HW = H * W
    itemsize = jnp.dtype(x_nchw.dtype).itemsize

    # Free view (no transposes): NCHW -> (N, C, H*W).
    x_flat = x_nchw.reshape(N, C, HW)
    # Fold gamma into the tiny (K, C) weight -> kernel epilogue is a pure store.
    w_scaled = (weight_kc * jnp.asarray(gamma, weight_kc.dtype)).astype(x_nchw.dtype)

    t_hw = _pick_hw_tile(HW, N, C, K, itemsize)
    hw_pad = _round_up(HW, t_hw)
    if hw_pad != HW:
        # Pad the pixel axis up to a tile multiple; padded columns are sliced
        # off below.  Costs at most one extra 128-lane column of HBM traffic.
        x_flat = jnp.pad(x_flat, ((0, 0), (0, 0), (0, hw_pad - HW)))

    grid = (N, hw_pad // t_hw)

    if C < _VPU_CHANNEL_CUTOFF:
        kernel = _vpu_kernel
        w_spec = pl.BlockSpec(memory_space=pltpu.MemorySpace.SMEM)
    else:
        kernel = _mxu_kernel
        # Constant block index -> the tiny weight stays resident in VMEM.
        w_spec = pl.BlockSpec((K, C), lambda n, h: (0, 0))

    cost = pl.CostEstimate(
        flops=2 * N * hw_pad * C * K,
        transcendentals=0,
        bytes_accessed=itemsize * (N * C * hw_pad + K * C + N * K * hw_pad),
    )

    out_flat = pl.pallas_call(
        kernel,
        out_shape=jax.ShapeDtypeStruct((N, K, hw_pad), x_nchw.dtype),
        grid_spec=pltpu.PrefetchScalarGridSpec(
            num_scalar_prefetch=0,
            grid=grid,
            in_specs=[
                # Activation: batch dim squeezed, full C, lane-dense HW tile.
                pl.BlockSpec((None, C, t_hw), lambda n, h: (n, 0, h)),
                w_spec,
            ],
            out_specs=pl.BlockSpec((None, K, t_hw), lambda n, h: (n, 0, h)),
        ),
        compiler_params=pltpu.CompilerParams(
            dimension_semantics=("parallel", "parallel"),
            vmem_limit_bytes=_VMEM_LIMIT_BYTES,
        ),
        cost_estimate=cost,
    )(x_flat, w_scaled)

    # Slice off pixel padding; free view back to NCHW.
    return out_flat[:, :, :HW].reshape(N, K, H, W)


def reference_forward(x_nchw, weight_kc, gamma):
    # Pure-JAX exact-f32 reference of the 1x1 conv (no bias) + gamma scale.
    return jnp.einsum("nchw,kc->nkhw", x_nchw, weight_kc,
                      precision=jax.lax.Precision.HIGHEST) * gamma


if __name__ == "__main__":
    key = jax.random.PRNGKey(0)
    k_x, k_w, k_x2, k_w2 = jax.random.split(key, 4)

    # --- Shapes matching the PyTorch module at small scale -------------------
    N, C, H, W = 2, 4, 16, 16      # batch, inchannels, spatial
    num_class = 10
    gamma = 0.1                    # config['gamma']

    x = jax.random.normal(k_x, (N, C, H, W), dtype=jnp.float32)
    # Conv2d(inchannels, num_class, 1, bias=False).weight: (num_class, C, 1, 1)
    # -> squeeze the 1x1 spatial dims to (num_class, C).
    weight = (jax.random.normal(k_w, (num_class, C), dtype=jnp.float32)
              * (1.0 / jnp.sqrt(C)))

    out = jax.block_until_ready(linear_classifier_forward(x, weight, gamma))
    ref = reference_forward(x, weight, gamma)
    assert out.shape == (N, num_class, H, W)
    # Tiny-C path is an exact f32 VPU MAC -> tight tolerance.
    assert jnp.allclose(out, ref, atol=1e-5, rtol=1e-5), "mismatch (VPU path)"

    # --- Also exercise the MXU path + pixel-axis padding (C>=32, HW%128!=0) ---
    C2, H2, W2 = 64, 10, 10
    x2 = jax.random.normal(k_x2, (N, C2, H2, W2), dtype=jnp.float32)
    w2 = (jax.random.normal(k_w2, (num_class, C2), dtype=jnp.float32)
          * (1.0 / jnp.sqrt(C2)))
    out2 = jax.block_until_ready(linear_classifier_forward(x2, w2, gamma))
    ref2 = reference_forward(x2, w2, gamma)
    assert out2.shape == (N, num_class, H2, W2)
    # MXU path is deliberately one bf16 pass (DEFAULT precision) -> loose tol.
    assert jnp.allclose(out2, ref2, atol=5e-2, rtol=5e-2), "mismatch (MXU path)"

    print("KERNEL_OK")
</pallas_src>

<mosaic_0001>
module attributes {stable_mosaic.version = 11 : i64} {
  func.func @_vpu_kernel(%arg0: i32, %arg1: i32, %arg2: memref<1x4x256xf32, #tpu.memory_space<vmem>>, %arg3: memref<10x4xf32, #tpu.memory_space<smem>>, %arg4: memref<1x10x256xf32, #tpu.memory_space<vmem>>) attributes {dimension_semantics = [#tpu.dimension_semantics<parallel>, #tpu.dimension_semantics<parallel>], iteration_bounds = array<i64: 2, 1>, scalar_prefetch = 0 : i64, scratch_operands = 0 : i64, tpu.core_type = #tpu.core_type<tc>, window_params = [{transform_indices = @transform_0, window_bounds = array<i64: 1, 4, 256>}, {transform_indices = @transform_1, window_bounds = array<i64: 10, 4>}, {transform_indices = @transform_2, window_bounds = array<i64: 1, 10, 256>}]} {
    %c0 = arith.constant 0 : index
    %c0_0 = arith.constant 0 : index
    %c0_1 = arith.constant 0 : index
    %0 = vector.load %arg2[%c0, %c0_0, %c0_1] : memref<1x4x256xf32, #tpu.memory_space<vmem>>, vector<1x4x256xf32>
    %1 = vector.shape_cast %0 : vector<1x4x256xf32> to vector<4x256xf32>
    %c0_2 = arith.constant 0 : index
    %c0_3 = arith.constant 0 : index
    %2 = memref.load %arg3[%c0_2, %c0_3] : memref<10x4xf32, #tpu.memory_space<smem>>
    %3 = vector.extract_strided_slice %1 {offsets = [0, 0], sizes = [1, 256], strides = [1, 1]} : vector<4x256xf32> to vector<1x256xf32>
    %4 = vector.broadcast %2 : f32 to vector<1x256xf32>
    %5 = arith.mulf %4, %3 : vector<1x256xf32>
    %c0_4 = arith.constant 0 : index
    %c1 = arith.constant 1 : index
    %6 = memref.load %arg3[%c0_4, %c1] : memref<10x4xf32, #tpu.memory_space<smem>>
    %7 = vector.extract_strided_slice %1 {offsets = [1, 0], sizes = [1, 256], strides = [1, 1]} : vector<4x256xf32> to vector<1x256xf32>
    %8 = vector.broadcast %6 : f32 to vector<1x256xf32>
    %9 = arith.mulf %8, %7 : vector<1x256xf32>
    %10 = arith.addf %5, %9 : vector<1x256xf32>
    %c0_5 = arith.constant 0 : index
    %c2 = arith.constant 2 : index
    %11 = memref.load %arg3[%c0_5, %c2] : memref<10x4xf32, #tpu.memory_space<smem>>
    %12 = vector.extract_strided_slice %1 {offsets = [2, 0], sizes = [1, 256], strides = [1, 1]} : vector<4x256xf32> to vector<1x256xf32>
    %13 = vector.broadcast %11 : f32 to vector<1x256xf32>
    %14 = arith.mulf %13, %12 : vector<1x256xf32>
    %15 = arith.addf %10, %14 : vector<1x256xf32>
    %c0_6 = arith.constant 0 : index
    %c3 = arith.constant 3 : index
    %16 = memref.load %arg3[%c0_6, %c3] : memref<10x4xf32, #tpu.memory_space<smem>>
    %17 = vector.extract_strided_slice %1 {offsets = [3, 0], sizes = [1, 256], strides = [1, 1]} : vector<4x256xf32> to vector<1x256xf32>
    %18 = vector.broadcast %16 : f32 to vector<1x256xf32>
    %19 = arith.mulf %18, %17 : vector<1x256xf32>
    %20 = arith.addf %15, %19 : vector<1x256xf32>
    %c0_7 = arith.constant 0 : index
    %c0_8 = arith.constant 0 : index
    %c0_9 = arith.constant 0 : index
    %21 = vector.load %arg4[%c0_7, %c0_8, %c0_9] : memref<1x10x256xf32, #tpu.memory_space<vmem>>, vector<1x1x256xf32>
    %22 = vector.shape_cast %21 : vector<1x1x256xf32> to vector<1x256xf32>
    %23 = vector.shape_cast %20 : vector<1x256xf32> to vector<1x1x256xf32>
    tpu.vector_store %arg4[%c0_7, %c0_8, %c0_9], %23 {strides = array<i32>} : memref<1x10x256xf32, #tpu.memory_space<vmem>>, vector<1x1x256xf32>,
    %c1_10 = arith.constant 1 : index
    %c0_11 = arith.constant 0 : index
    %24 = memref.load %arg3[%c1_10, %c0_11] : memref<10x4xf32, #tpu.memory_space<smem>>
    %25 = vector.extract_strided_slice %1 {offsets = [0, 0], sizes = [1, 256], strides = [1, 1]} : vector<4x256xf32> to vector<1x256xf32>
    %26 = vector.broadcast %24 : f32 to vector<1x256xf32>
    %27 = arith.mulf %26, %25 : vector<1x256xf32>
    %c1_12 = arith.constant 1 : index
    %c1_13 = arith.constant 1 : index
    %28 = memref.load %arg3[%c1_12, %c1_13] : memref<10x4xf32, #tpu.memory_space<smem>>
    %29 = vector.extract_strided_slice %1 {offsets = [1, 0], sizes = [1, 256], strides = [1, 1]} : vector<4x256xf32> to vector<1x256xf32>
    %30 = vector.broadcast %28 : f32 to vector<1x256xf32>
    %31 = arith.mulf %30, %29 : vector<1x256xf32>
    %32 = arith.addf %27, %31 : vector<1x256xf32>
    %c1_14 = arith.constant 1 : index
    %c2_15 = arith.constant 2 : index
    %33 = memref.load %arg3[%c1_14, %c2_15] : memref<10x4xf32, #tpu.memory_space<smem>>
    %34 = vector.extract_strided_slice %1 {offsets = [2, 0], sizes = [1, 256], strides = [1, 1]} : vector<4x256xf32> to vector<1x256xf32>
    %35 = vector.broadcast %33 : f32 to vector<1x256xf32>
    %36 = arith.mulf %35, %34 : vector<1x256xf32>
    %37 = arith.addf %32, %36 : vector<1x256xf32>
    %c1_16 = arith.constant 1 : index
    %c3_17 = arith.constant 3 : index
    %38 = memref.load %arg3[%c1_16, %c3_17] : memref<10x4xf32, #tpu.memory_space<smem>>
    %39 = vector.extract_strided_slice %1 {offsets = [3, 0], sizes = [1, 256], strides = [1, 1]} : vector<4x256xf32> to vector<1x256xf32>
    %40 = vector.broadcast %38 : f32 to vector<1x256xf32>
    %41 = arith.mulf %40, %39 : vector<1x256xf32>
    %42 = arith.addf %37, %41 : vector<1x256xf32>
    %c0_18 = arith.constant 0 : index
    %c1_19 = arith.constant 1 : index
    %c0_20 = arith.constant 0 : index
    %43 = vector.load %arg4[%c0_18, %c1_19, %c0_20] : memref<1x10x256xf32, #tpu.memory_space<vmem>>, vector<1x1x256xf32>
    %44 = vector.shape_cast %43 : vector<1x1x256xf32> to vector<1x256xf32>
    %45 = vector.shape_cast %42 : vector<1x256xf32> to vector<1x1x256xf32>
    tpu.vector_store %arg4[%c0_18, %c1_19, %c0_20], %45 {strides = array<i32>} : memref<1x10x256xf32, #tpu.memory_space<vmem>>, vector<1x1x256xf32>,
    %c2_21 = arith.constant 2 : index
    %c0_22 = arith.constant 0 : index
    %46 = memref.load %arg3[%c2_21, %c0_22] : memref<10x4xf32, #tpu.memory_space<smem>>
    %47 = vector.extract_strided_slice %1 {offsets = [0, 0], sizes = [1, 256], strides = [1, 1]} : vector<4x256xf32> to vector<1x256xf32>
    %48 = vector.broadcast %46 : f32 to vector<1x256xf32>
    %49 = arith.mulf %48, %47 : vector<1x256xf32>
    %c2_23 = arith.constant 2 : index
    %c1_24 = arith.constant 1 : index
    %50 = memref.load %arg3[%c2_23, %c1_24] : memref<10x4xf32, #tpu.memory_space<smem>>
    %51 = vector.extract_strided_slice %1 {offsets = [1, 0], sizes = [1, 256], strides = [1, 1]} : vector<4x256xf32> to vector<1x256xf32>
    %52 = vector.broadcast %50 : f32 to vector<1x256xf32>
    %53 = arith.mulf %52, %51 : vector<1x256xf32>
    %54 = arith.addf %49, %53 : vector<1x256xf32>
    %c2_25 = arith.constant 2 : index
    %c2_26 = arith.constant 2 : index
    %55 = memref.load %arg3[%c2_25, %c2_26] : memref<10x4xf32, #tpu.memory_space<smem>>
    %56 = vector.extract_strided_slice %1 {offsets = [2, 0], sizes = [1, 256], strides = [1, 1]} : vector<4x256xf32> to vector<1x256xf32>
    %57 = vector.broadcast %55 : f32 to vector<1x256xf32>
    %58 = arith.mulf %57, %56 : vector<1x256xf32>
    %59 = arith.addf %54, %58 : vector<1x256xf32>
    %c2_27 = arith.constant 2 : index
    %c3_28 = arith.constant 3 : index
    %60 = memref.load %arg3[%c2_27, %c3_28] : memref<10x4xf32, #tpu.memory_space<smem>>
    %61 = vector.extract_strided_slice %1 {offsets = [3, 0], sizes = [1, 256], strides = [1, 1]} : vector<4x256xf32> to vector<1x256xf32>
    %62 = vector.broadcast %60 : f32 to vector<1x256xf32>
    %63 = arith.mulf %62, %61 : vector<1x256xf32>
    %64 = arith.addf %59, %63 : vector<1x256xf32>
    %c0_29 = arith.constant 0 : index
    %c2_30 = arith.constant 2 : index
    %c0_31 = arith.constant 0 : index
    %65 = vector.load %arg4[%c0_29, %c2_30, %c0_31] : memref<1x10x256xf32, #tpu.memory_space<vmem>>, vector<1x1x256xf32>
    %66 = vector.shape_cast %65 : vector<1x1x256xf32> to vector<1x256xf32>
    %67 = vector.shape_cast %64 : vector<1x256xf32> to vector<1x1x256xf32>
    tpu.vector_store %arg4[%c0_29, %c2_30, %c0_31], %67 {strides = array<i32>} : memref<1x10x256xf32, #tpu.memory_space<vmem>>, vector<1x1x256xf32>,
    %c3_32 = arith.constant 3 : index
    %c0_33 = arith.constant 0 : index
    %68 = memref.load %arg3[%c3_32, %c0_33] : memref<10x4xf32, #tpu.memory_space<smem>>
    %69 = vector.extract_strided_slice %1 {offsets = [0, 0], sizes = [1, 256], strides = [1, 1]} : vector<4x256xf32> to vector<1x256xf32>
    %70 = vector.broadcast %68 : f32 to vector<1x256xf32>
    %71 = arith.mulf %70, %69 : vector<1x256xf32>
    %c3_34 = arith.constant 3 : index
    %c1_35 = arith.constant 1 : index
    %72 = memref.load %arg3[%c3_34, %c1_35] : memref<10x4xf32, #tpu.memory_space<smem>>
    %73 = vector.extract_strided_slice %1 {offsets = [1, 0], sizes = [1, 256], strides = [1, 1]} : vector<4x256xf32> to vector<1x256xf32>
    %74 = vector.broadcast %72 : f32 to vector<1x256xf32>
    %75 = arith.mulf %74, %73 : vector<1x256xf32>
    %76 = arith.addf %71, %75 : vector<1x256xf32>
    %c3_36 = arith.constant 3 : index
    %c2_37 = arith.constant 2 : index
    %77 = memref.load %arg3[%c3_36, %c2_37] : memref<10x4xf32, #tpu.memory_space<smem>>
    %78 = vector.extract_strided_slice %1 {offsets = [2, 0], sizes = [1, 256], strides = [1, 1]} : vector<4x256xf32> to vector<1x256xf32>
    %79 = vector.broadcast %77 : f32 to vector<1x256xf32>
    %80 = arith.mulf %79, %78 : vector<1x256xf32>
    %81 = arith.addf %76, %80 : vector<1x256xf32>
    %c3_38 = arith.constant 3 : index
    %c3_39 = arith.constant 3 : index
    %82 = memref.load %arg3[%c3_38, %c3_39] : memref<10x4xf32, #tpu.memory_space<smem>>
    %83 = vector.extract_strided_slice %1 {offsets = [3, 0], sizes = [1, 256], strides = [1, 1]} : vector<4x256xf32> to vector<1x256xf32>
    %84 = vector.broadcast %82 : f32 to vector<1x256xf32>
    %85 = arith.mulf %84, %83 : vector<1x256xf32>
    %86 = arith.addf %81, %85 : vector<1x256xf32>
    %c0_40 = arith.constant 0 : index
    %c3_41 = arith.constant 3 : index
    %c0_42 = arith.constant 0 : index
    %87 = vector.load %arg4[%c0_40, %c3_41, %c0_42] : memref<1x10x256xf32, #tpu.memory_space<vmem>>, vector<1x1x256xf32>
    %88 = vector.shape_cast %87 : vector<1x1x256xf32> to vector<1x256xf32>
    %89 = vector.shape_cast %86 : vector<1x256xf32> to vector<1x1x256xf32>
    tpu.vector_store %arg4[%c0_40, %c3_41, %c0_42], %89 {strides = array<i32>} : memref<1x10x256xf32, #tpu.memory_space<vmem>>, vector<1x1x256xf32>,
    %c4 = arith.constant 4 : index
    %c0_43 = arith.constant 0 : index
    %90 = memref.load %arg3[%c4, %c0_43] : memref<10x4xf32, #tpu.memory_space<smem>>
    %91 = vector.extract_strided_slice %1 {offsets = [0, 0], sizes = [1, 256], strides = [1, 1]} : vector<4x256xf32> to vector<1x256xf32>
    %92 = vector.broadcast %90 : f32 to vector<1x256xf32>
    %93 = arith.mulf %92, %91 : vector<1x256xf32>
    %c4_44 = arith.constant 4 : index
    %c1_45 = arith.constant 1 : index
    %94 = memref.load %arg3[%c4_44, %c1_45] : memref<10x4xf32, #tpu.memory_space<smem>>
    %95 = vector.extract_strided_slice %1 {offsets = [1, 0], sizes = [1, 256], strides = [1, 1]} : vector<4x256xf32> to vector<1x256xf32>
    %96 = vector.broadcast %94 : f32 to vector<1x256xf32>
    %97 = arith.mulf %96, %95 : vector<1x256xf32>
    %98 = arith.addf %93, %97 : vector<1x256xf32>
    %c4_46 = arith.constant 4 : index
    %c2_47 = arith.constant 2 : index
    %99 = memref.load %arg3[%c4_46, %c2_47] : memref<10x4xf32, #tpu.memory_space<smem>>
    %100 = vector.extract_strided_slice %1 {offsets = [2, 0], sizes = [1, 256], strides = [1, 1]} : vector<4x256xf32> to vector<1x256xf32>
    %101 = vector.broadcast %99 : f32 to vector<1x256xf32>
    %102 = arith.mulf %101, %100 : vector<1x256xf32>
    %103 = arith.addf %98, %102 : vector<1x256xf32>
    %c4_48 = arith.constant 4 : index
    %c3_49 = arith.constant 3 : index
    %104 = memref.load %arg3[%c4_48, %c3_49] : memref<10x4xf32, #tpu.memory_space<smem>>
    %105 = vector.extract_strided_slice %1 {offsets = [3, 0], sizes = [1, 256], strides = [1, 1]} : vector<4x256xf32> to vector<1x256xf32>
    %106 = vector.broadcast %104 : f32 to vector<1x256xf32>
    %107 = arith.mulf %106, %105 : vector<1x256xf32>
    %108 = arith.addf %103, %107 : vector<1x256xf32>
    %c0_50 = arith.constant 0 : index
    %c4_51 = arith.constant 4 : index
    %c0_52 = arith.constant 0 : index
    %109 = vector.load %arg4[%c0_50, %c4_51, %c0_52] : memref<1x10x256xf32, #tpu.memory_space<vmem>>, vector<1x1x256xf32>
    %110 = vector.shape_cast %109 : vector<1x1x256xf32> to vector<1x256xf32>
    %111 = vector.shape_cast %108 : vector<1x256xf32> to vector<1x1x256xf32>
    tpu.vector_store %arg4[%c0_50, %c4_51, %c0_52], %111 {strides = array<i32>} : memref<1x10x256xf32, #tpu.memory_space<vmem>>, vector<1x1x256xf32>,
    %c5 = arith.constant 5 : index
    %c0_53 = arith.constant 0 : index
    %112 = memref.load %arg3[%c5, %c0_53] : memref<10x4xf32, #tpu.memory_space<smem>>
    %113 = vector.extract_strided_slice %1 {offsets = [0, 0], sizes = [1, 256], strides = [1, 1]} : vector<4x256xf32> to vector<1x256xf32>
    %114 = vector.broadcast %112 : f32 to vector<1x256xf32>
    %115 = arith.mulf %114, %113 : vector<1x256xf32>
    %c5_54 = arith.constant 5 : index
    %c1_55 = arith.constant 1 : index
    %116 = memref.load %arg3[%c5_54, %c1_55] : memref<10x4xf32, #tpu.memory_space<smem>>
    %117 = vector.extract_strided_slice %1 {offsets = [1, 0], sizes = [1, 256], strides = [1, 1]} : vector<4x256xf32> to vector<1x256xf32>
    %118 = vector.broadcast %116 : f32 to vector<1x256xf32>
    %119 = arith.mulf %118, %117 : vector<1x256xf32>
    %120 = arith.addf %115, %119 : vector<1x256xf32>
    %c5_56 = arith.constant 5 : index
    %c2_57 = arith.constant 2 : index
    %121 = memref.load %arg3[%c5_56, %c2_57] : memref<10x4xf32, #tpu.memory_space<smem>>
    %122 = vector.extract_strided_slice %1 {offsets = [2, 0], sizes = [1, 256], strides = [1, 1]} : vector<4x256xf32> to vector<1x256xf32>
    %123 = vector.broadcast %121 : f32 to vector<1x256xf32>
    %124 = arith.mulf %123, %122 : vector<1x256xf32>
    %125 = arith.addf %120, %124 : vector<1x256xf32>
    %c5_58 = arith.constant 5 : index
    %c3_59 = arith.constant 3 : index
    %126 = memref.load %arg3[%c5_58, %c3_59] : memref<10x4xf32, #tpu.memory_space<smem>>
    %127 = vector.extract_strided_slice %1 {offsets = [3, 0], sizes = [1, 256], strides = [1, 1]} : vector<4x256xf32> to vector<1x256xf32>
    %128 = vector.broadcast %126 : f32 to vector<1x256xf32>
    %129 = arith.mulf %128, %127 : vector<1x256xf32>
    %130 = arith.addf %125, %129 : vector<1x256xf32>
    %c0_60 = arith.constant 0 : index
    %c5_61 = arith.constant 5 : index
    %c0_62 = arith.constant 0 : index
    %131 = vector.load %arg4[%c0_60, %c5_61, %c0_62] : memref<1x10x256xf32, #tpu.memory_space<vmem>>, vector<1x1x256xf32>
    %132 = vector.shape_cast %131 : vector<1x1x256xf32> to vector<1x256xf32>
    %133 = vector.shape_cast %130 : vector<1x256xf32> to vector<1x1x256xf32>
    tpu.vector_store %arg4[%c0_60, %c5_61, %c0_62], %133 {strides = array<i32>} : memref<1x10x256xf32, #tpu.memory_space<vmem>>, vector<1x1x256xf32>,
    %c6 = arith.constant 6 : index
    %c0_63 = arith.constant 0 : index
    %134 = memref.load %arg3[%c6, %c0_63] : memref<10x4xf32, #tpu.memory_space<smem>>
    %135 = vector.extract_strided_slice %1 {offsets = [0, 0], sizes = [1, 256], strides = [1, 1]} : vector<4x256xf32> to vector<1x256xf32>
    %136 = vector.broadcast %134 : f32 to vector<1x256xf32>
    %137 = arith.mulf %136, %135 : vector<1x256xf32>
    %c6_64 = arith.constant 6 : index
    %c1_65 = arith.constant 1 : index
    %138 = memref.load %arg3[%c6_64, %c1_65] : memref<10x4xf32, #tpu.memory_space<smem>>
    %139 = vector.extract_strided_slice %1 {offsets = [1, 0], sizes = [1, 256], strides = [1, 1]} : vector<4x256xf32> to vector<1x256xf32>
    %140 = vector.broadcast %138 : f32 to vector<1x256xf32>
    %141 = arith.mulf %140, %139 : vector<1x256xf32>
    %142 = arith.addf %137, %141 : vector<1x256xf32>
    %c6_66 = arith.constant 6 : index
    %c2_67 = arith.constant 2 : index
    %143 = memref.load %arg3[%c6_66, %c2_67] : memref<10x4xf32, #tpu.memory_space<smem>>
    %144 = vector.extract_strided_slice %1 {offsets = [2, 0], sizes = [1, 256], strides = [1, 1]} : vector<4x256xf32> to vector<1x256xf32>
    %145 = vector.broadcast %143 : f32 to vector<1x256xf32>
    %146 = arith.mulf %145, %144 : vector<1x256xf32>
    %147 = arith.addf %142, %146 : vector<1x256xf32>
    %c6_68 = arith.constant 6 : index
    %c3_69 = arith.constant 3 : index
    %148 = memref.load %arg3[%c6_68, %c3_69] : memref<10x4xf32, #tpu.memory_space<smem>>
    %149 = vector.extract_strided_slice %1 {offsets = [3, 0], sizes = [1, 256], strides = [1, 1]} : vector<4x256xf32> to vector<1x256xf32>
    %150 = vector.broadcast %148 : f32 to vector<1x256xf32>
    %151 = arith.mulf %150, %149 : vector<1x256xf32>
    %152 = arith.addf %147, %151 : vector<1x256xf32>
    %c0_70 = arith.constant 0 : index
    %c6_71 = arith.constant 6 : index
    %c0_72 = arith.constant 0 : index
    %153 = vector.load %arg4[%c0_70, %c6_71, %c0_72] : memref<1x10x256xf32, #tpu.memory_space<vmem>>, vector<1x1x256xf32>
    %154 = vector.shape_cast %153 : vector<1x1x256xf32> to vector<1x256xf32>
    %155 = vector.shape_cast %152 : vector<1x256xf32> to vector<1x1x256xf32>
    tpu.vector_store %arg4[%c0_70, %c6_71, %c0_72], %155 {strides = array<i32>} : memref<1x10x256xf32, #tpu.memory_space<vmem>>, vector<1x1x256xf32>,
    %c7 = arith.constant 7 : index
    %c0_73 = arith.constant 0 : index
    %156 = memref.load %arg3[%c7, %c0_73] : memref<10x4xf32, #tpu.memory_space<smem>>
    %157 = vector.extract_strided_slice %1 {offsets = [0, 0], sizes = [1, 256], strides = [1, 1]} : vector<4x256xf32> to vector<1x256xf32>
    %158 = vector.broadcast %156 : f32 to vector<1x256xf32>
    %159 = arith.mulf %158, %157 : vector<1x256xf32>
    %c7_74 = arith.constant 7 : index
    %c1_75 = arith.constant 1 : index
    %160 = memref.load %arg3[%c7_74, %c1_75] : memref<10x4xf32, #tpu.memory_space<smem>>
    %161 = vector.extract_strided_slice %1 {offsets = [1, 0], sizes = [1, 256], strides = [1, 1]} : vector<4x256xf32> to vector<1x256xf32>
    %162 = vector.broadcast %160 : f32 to vector<1x256xf32>
    %163 = arith.mulf %162, %161 : vector<1x256xf32>
    %164 = arith.addf %159, %163 : vector<1x256xf32>
    %c7_76 = arith.constant 7 : index
    %c2_77 = arith.constant 2 : index
    %165 = memref.load %arg3[%c7_76, %c2_77] : memref<10x4xf32, #tpu.memory_space<smem>>
    %166 = vector.extract_strided_slice %1 {offsets = [2, 0], sizes = [1, 256], strides = [1, 1]} : vector<4x256xf32> to vector<1x256xf32>
    %167 = vector.broadcast %165 : f32 to vector<1x256xf32>
    %168 = arith.mulf %167, %166 : vector<1x256xf32>
    %169 = arith.addf %164, %168 : vector<1x256xf32>
    %c7_78 = arith.constant 7 : index
    %c3_79 = arith.constant 3 : index
    %170 = memref.load %arg3[%c7_78, %c3_79] : memref<10x4xf32, #tpu.memory_space<smem>>
    %171 = vector.extract_strided_slice %1 {offsets = [3, 0], sizes = [1, 256], strides = [1, 1]} : vector<4x256xf32> to vector<1x256xf32>
    %172 = vector.broadcast %170 : f32 to vector<1x256xf32>
    %173 = arith.mulf %172, %171 : vector<1x256xf32>
    %174 = arith.addf %169, %173 : vector<1x256xf32>
    %c0_80 = arith.constant 0 : index
    %c7_81 = arith.constant 7 : index
    %c0_82 = arith.constant 0 : index
    %175 = vector.load %arg4[%c0_80, %c7_81, %c0_82] : memref<1x10x256xf32, #tpu.memory_space<vmem>>, vector<1x1x256xf32>
    %176 = vector.shape_cast %175 : vector<1x1x256xf32> to vector<1x256xf32>
    %177 = vector.shape_cast %174 : vector<1x256xf32> to vector<1x1x256xf32>
    tpu.vector_store %arg4[%c0_80, %c7_81, %c0_82], %177 {strides = array<i32>} : memref<1x10x256xf32, #tpu.memory_space<vmem>>, vector<1x1x256xf32>,
    %c8 = arith.constant 8 : index
    %c0_83 = arith.constant 0 : index
    %178 = memref.load %arg3[%c8, %c0_83] : memref<10x4xf32, #tpu.memory_space<smem>>
    %179 = vector.extract_strided_slice %1 {offsets = [0, 0], sizes = [1, 256], strides = [1, 1]} : vector<4x256xf32> to vector<1x256xf32>
    %180 = vector.broadcast %178 : f32 to vector<1x256xf32>
    %181 = arith.mulf %180, %179 : vector<1x256xf32>
    %c8_84 = arith.constant 8 : index
    %c1_85 = arith.constant 1 : index
    %182 = memref.load %arg3[%c8_84, %c1_85] : memref<10x4xf32, #tpu.memory_space<smem>>
    %183 = vector.extract_strided_slice %1 {offsets = [1, 0], sizes = [1, 256], strides = [1, 1]} : vector<4x256xf32> to vector<1x256xf32>
    %184 = vector.broadcast %182 : f32 to vector<1x256xf32>
    %185 = arith.mulf %184, %183 : vector<1x256xf32>
    %186 = arith.addf %181, %185 : vector<1x256xf32>
    %c8_86 = arith.constant 8 : index
    %c2_87 = arith.constant 2 : index
    %187 = memref.load %arg3[%c8_86, %c2_87] : memref<10x4xf32, #tpu.memory_space<smem>>
    %188 = vector.extract_strided_slice %1 {offsets = [2, 0], sizes = [1, 256], strides = [1, 1]} : vector<4x256xf32> to vector<1x256xf32>
    %189 = vector.broadcast %187 : f32 to vector<1x256xf32>
    %190 = arith.mulf %189, %188 : vector<1x256xf32>
    %191 = arith.addf %186, %190 : vector<1x256xf32>
    %c8_88 = arith.constant 8 : index
    %c3_89 = arith.constant 3 : index
    %192 = memref.load %arg3[%c8_88, %c3_89] : memref<10x4xf32, #tpu.memory_space<smem>>
    %193 = vector.extract_strided_slice %1 {offsets = [3, 0], sizes = [1, 256], strides = [1, 1]} : vector<4x256xf32> to vector<1x256xf32>
    %194 = vector.broadcast %192 : f32 to vector<1x256xf32>
    %195 = arith.mulf %194, %193 : vector<1x256xf32>
    %196 = arith.addf %191, %195 : vector<1x256xf32>
    %c0_90 = arith.constant 0 : index
    %c8_91 = arith.constant 8 : index
    %c0_92 = arith.constant 0 : index
    %197 = vector.load %arg4[%c0_90, %c8_91, %c0_92] : memref<1x10x256xf32, #tpu.memory_space<vmem>>, vector<1x1x256xf32>
    %198 = vector.shape_cast %197 : vector<1x1x256xf32> to vector<1x256xf32>
    %199 = vector.shape_cast %196 : vector<1x256xf32> to vector<1x1x256xf32>
    tpu.vector_store %arg4[%c0_90, %c8_91, %c0_92], %199 {strides = array<i32>} : memref<1x10x256xf32, #tpu.memory_space<vmem>>, vector<1x1x256xf32>,
    %c9 = arith.constant 9 : index
    %c0_93 = arith.constant 0 : index
    %200 = memref.load %arg3[%c9, %c0_93] : memref<10x4xf32, #tpu.memory_space<smem>>
    %201 = vector.extract_strided_slice %1 {offsets = [0, 0], sizes = [1, 256], strides = [1, 1]} : vector<4x256xf32> to vector<1x256xf32>
    %202 = vector.broadcast %200 : f32 to vector<1x256xf32>
    %203 = arith.mulf %202, %201 : vector<1x256xf32>
    %c9_94 = arith.constant 9 : index
    %c1_95 = arith.constant 1 : index
    %204 = memref.load %arg3[%c9_94, %c1_95] : memref<10x4xf32, #tpu.memory_space<smem>>
    %205 = vector.extract_strided_slice %1 {offsets = [1, 0], sizes = [1, 256], strides = [1, 1]} : vector<4x256xf32> to vector<1x256xf32>
    %206 = vector.broadcast %204 : f32 to vector<1x256xf32>
    %207 = arith.mulf %206, %205 : vector<1x256xf32>
    %208 = arith.addf %203, %207 : vector<1x256xf32>
    %c9_96 = arith.constant 9 : index
    %c2_97 = arith.constant 2 : index
    %209 = memref.load %arg3[%c9_96, %c2_97] : memref<10x4xf32, #tpu.memory_space<smem>>
    %210 = vector.extract_strided_slice %1 {offsets = [2, 0], sizes = [1, 256], strides = [1, 1]} : vector<4x256xf32> to vector<1x256xf32>
    %211 = vector.broadcast %209 : f32 to vector<1x256xf32>
    %212 = arith.mulf %211, %210 : vector<1x256xf32>
    %213 = arith.addf %208, %212 : vector<1x256xf32>
    %c9_98 = arith.constant 9 : index
    %c3_99 = arith.constant 3 : index
    %214 = memref.load %arg3[%c9_98, %c3_99] : memref<10x4xf32, #tpu.memory_space<smem>>
    %215 = vector.extract_strided_slice %1 {offsets = [3, 0], sizes = [1, 256], strides = [1, 1]} : vector<4x256xf32> to vector<1x256xf32>
    %216 = vector.broadcast %214 : f32 to vector<1x256xf32>
    %217 = arith.mulf %216, %215 : vector<1x256xf32>
    %218 = arith.addf %213, %217 : vector<1x256xf32>
    %c0_100 = arith.constant 0 : index
    %c9_101 = arith.constant 9 : index
    %c0_102 = arith.constant 0 : index
    %219 = vector.load %arg4[%c0_100, %c9_101, %c0_102] : memref<1x10x256xf32, #tpu.memory_space<vmem>>, vector<1x1x256xf32>
    %220 = vector.shape_cast %219 : vector<1x1x256xf32> to vector<1x256xf32>
    %221 = vector.shape_cast %218 : vector<1x256xf32> to vector<1x1x256xf32>
    tpu.vector_store %arg4[%c0_100, %c9_101, %c0_102], %221 {strides = array<i32>} : memref<1x10x256xf32, #tpu.memory_space<vmem>>, vector<1x1x256xf32>,
    return
  }
  func.func @transform_0(%arg0: i32, %arg1: i32) -> (i32, i32, i32) {
    %c0_i32 = arith.constant 0 : i32
    %c0_i32_0 = arith.constant 0 : i32
    return %arg0, %c0_i32, %arg1 : i32, i32, i32
  }
  func.func @transform_1(%arg0: i32, %arg1: i32) -> (i32, i32) {
    %c0_i32 = arith.constant 0 : i32
    %c0_i32_0 = arith.constant 0 : i32
    %c0_i32_1 = arith.constant 0 : i32
    return %c0_i32, %c0_i32_0 : i32, i32
  }
  func.func @transform_2(%arg0: i32, %arg1: i32) -> (i32, i32, i32) {
    %c0_i32 = arith.constant 0 : i32
    %c0_i32_0 = arith.constant 0 : i32
    return %arg0, %c0_i32, %arg1 : i32, i32, i32
  }
}

</mosaic_0001>

<bundles_post_ra>
// kernel: tpu_custom_call.1
= control target key start
LH: loop header
LB: loop body
LE: loop exit
PB: predicated region body
PF: predicated region fallthrough
CT: control target
= control target key end

     0   :  { %7 = vsyncpa [#allocation3], 0  ;;  %s834_s9 = smov 0   ;;  %s836_s10 = smov 0   ;;  %s1056_s0 = inlined_call_operand.vmem [shape: f32[2,4,256], index: 0, kind: input, shape index: {}]   ;;  %s1057_s1 = inlined_call_operand.vmem [shape: f32[10,4], index: 1, kind: input, shape index: {}]   ;;  %s1058_s2 = inlined_call_operand.vmem [shape: f32[2,10,256], index: 2, kind: output, shape index: {}]  }
   0x1   :  { %s838_s11 = smov 0  }
   0x2 LB: > { %s643_s12 = sadd.s32 4294967295, %s814_s11   ;;  %s25_s13 = sadd.s32 1, %s810_s10  ;;  %s814_s11 = sphi %s838_s11, %s13_s11   ;;  %s810_s10 = sphi %s836_s10, %s1062_s10   ;;  %s806_s9 = sphi %s834_s9, %s1061_s9  }
   0x3   : > { %p27_p0 = scmp.ge.s32.totalorder %s25_s13, 2  ;;  %p645_p1 = scmp.ge.s32.totalorder %s814_s11, 1 }
   0x4   : > { %p107_p2 = scmp.lt.s32.totalorder %s814_s11, 3  ;;  %p744_p4 = scmp.eq.s32.totalorder %s643_s12, 0 }
   0x5   : > { %s1064_s13 = smov (%p27_p0, %s25_s13), 0  ;;  %s118_s16 = sshll.u32 %s1057_s1, 4  ;;  %s119_s16 = int_to_ptr.vmem [resolvable:$true] %s118_s16 }
   0x6   : > { %p108_p3 = pnand %p645_p1, %p107_p2  ;;  %s816_s17 = smov [#allocation2]  }
   0x7   : > { %s817_s18 = smov 128   ;;  %s818_s19 = smov 8  }
   0x8   : > { %p740_p5 = pneg %p108_p3  ;;  %147 = sbr.rel (%p108_p3) target bundleno = 75 (0x4b), region = 28 }
   0xa   : > { %p741_p6 = pnand %p744_p4, %p740_p5 }
   0xc   : > { %743 = dma.vmem_to_smem (!%p741_p6), %s119_s16, 256, %s816_s17, [#allocation3], %s817_s18, %s817_s18, %s818_s19  }
   0xd   : > { %801 = dma.done.wait (%p744_p4), [#allocation3], 256  }
   0xe   : > { %803 = vsyncadd (%p744_p4), [#allocation3], 4294967040 }
   0xf   : > { %154 = sfence }
  0x10   : > { %p180_p7 = scmp.lt.s32.totalorder %s806_s9, 1  ;;  %s200_s20 = sld [smem:[#allocation2]]  ;;  %v232_v14 = vlaneseq  ;;  %vm229_vm0 = vcmask 1040384  }
  0x11   : > { %s654_s21 = sld [smem:[#allocation2 + $0x1]] }
  0x12   : > { %s1066_s9 = smov (!%p180_p7, %s806_s9), 1  ;;  %s656_s22 = sld [smem:[#allocation2 + $0x2]]  ;;  %vm885_vm1 = vcmp.lt.s32.totalorder %v232_v14, 256 }
  0x13   : > { %s734_s23 = sshll.u32 %s1066_s9, 3  ;;  %s658_s27 = sld [smem:[#allocation2 + $0x3]] }
  0x14   : > { %s187_s26 = scalar_lea.vmem %s1056_s0, %s734_s23  ;;  %s660_s28 = sld [smem:[#allocation2 + $0x80]] }
  0x15   : > { %v862_v0 = vld [vmem:[%s187_s26] sm:$0xff]  ;;  %s661_s29 = sld [smem:[#allocation2 + $0x81]]  ;;  %s735_s12 = sshll.u32 %s1066_s9, 5 }
  0x16   : > { %v201_v1 = vstv %s200_s20  ;;  %s663_s30 = sld [smem:[#allocation2 + $0x82]]  ;;  %s896_s18 = scalar_lea.vmem %s1058_s2, %s735_s12 }
  0x17   : > { %v204_v2 = vstv %s654_s21  ;;  %v202_v3 = vmul.f32 %v201_v1, %v862_v0  ;;  %s665_s3 = sld [smem:[#allocation2 + $0x83]] }
  0x18   : > { %v205_v4 = vmul.f32 %v204_v2, %v862_v0  ;;  %v212_v5 = vstv %s656_s22  ;;  %s668_s4 = sld [smem:[#allocation2 + $0x100]] }
  0x19   : > { %v213_v7 = vmul.f32 %v212_v5, %v862_v0  ;;  %v220_v10 = vstv %s658_s27  ;;  %s867_s5 = sld [smem:[#allocation2 + $0x101]] }
  0x1a   : > { %v655_v6 = vrot.slane %v205_v4, 9  ;;  %v221_v11 = vmul.f32 %v220_v10, %v862_v0  ;;  %v239_v12 = vstv %s660_s28  ;;  %s870_s6 = sld [smem:[#allocation2 + $0x102]] }
  0x1b   : > { %v657_v9 = vrot.slane %v213_v7, 10  ;;  %v242_v15 = vstv %s661_s29  ;;  %s872_s7 = sld [smem:[#allocation2 + $0x103]]  ;;  %v240_v17 = vmul.f32 %v239_v12, %v862_v0 }
  0x1c   : > { %v210_v8 = vadd.f32 %v655_v6, %v202_v3  ;;  %v659_v16 = vrot.slane %v221_v11, 11  ;;  %v243_v18 = vmul.f32 %v242_v15, %v862_v0  ;;  %v250_v19 = vstv %s663_s30  ;;  %s876_s8 = sld [smem:[#allocation2 + $0x180]] }
  0x1d   : > { %v251_v20 = vmul.f32 %v250_v19, %v862_v0  ;;  %v258_v21 = vstv %s665_s3  ;;  %s880_s14 = sld [smem:[#allocation2 + $0x181]] }
  0x1e   : > { %v218_v13 = vadd.f32 %v657_v9, %v210_v8  ;;  %v662_v23 = vrot.slane %v243_v18, 9  ;;  %v259_v24 = vmul.f32 %v258_v21, %v862_v0  ;;  %v273_v25 = vstv %s668_s4  ;;  %s883_s15 = sld [smem:[#allocation2 + $0x182]] }
  0x1f   : > { %v664_v27 = vrot.slane %v251_v20, 10  ;;  %v274_v28 = vmul.f32 %v273_v25, %v862_v0  ;;  %v276_v29 = vstv %s867_s5  ;;  %s891_s9 = sld [smem:[#allocation2 + $0x183]] }
  0x20   : > { %v226_v22 = vadd.f32 %v659_v16, %v218_v13  ;;  %v248_v31 = vadd.f32 %v662_v23, %v240_v17  ;;  %v666_v32 = vrot.slane %v259_v24, 11  ;;  %v277_v33 = vmul.f32 %v276_v29, %v862_v0  ;;  %s899_s19 = sld [smem:[#allocation2 + $0x200]] }
  0x21   : > { %v284_v34 = vstv %s870_s6  ;;  %v292_v35 = vstv %s872_s7  ;;  %s903_s20 = sld [smem:[#allocation2 + $0x201]] }
  0x22   : > { %v228_v30 = vrot.slane %v226_v22, 3  ;;  %v256_v37 = vadd.f32 %v664_v27, %v248_v31  ;;  %v670_v38 = vrot.slane %v277_v33, 9  ;;  %v285_v39 = vmul.f32 %v284_v34, %v862_v0  ;;  %s907_s21 = sld [smem:[#allocation2 + $0x202]] }
  0x23   : > { %v293_v40 = vmul.f32 %v292_v35, %v862_v0  ;;  %v307_v41 = vstv %s876_s8  ;;  %v310_v42 = vstv %s880_s14  ;;  %s915_s22 = sld [smem:[#allocation2 + $0x203]] }
  0x24   : > { %v230_v36 = vsel %vm229_vm0, %v226_v22, %v228_v30  ;;  %v264_v43 = vadd.f32 %v666_v32, %v256_v37  ;;  %v282_v44 = vadd.f32 %v670_v38, %v274_v28  ;;  %v672_v45 = vrot.slane %v285_v39, 10  ;;  %s918_s23 = sld [smem:[#allocation2 + $0x280]] }
  0x25   : > { %236 = vst.msk [vmem:[%s896_s18] ss:$8 sm:$0x3] %vm885_vm1, %v230_v36  ;;  %v308_v46 = vmul.f32 %v307_v41, %v862_v0  ;;  %v674_v47 = vrot.slane %v293_v40, 11  ;;  %v311_v48 = vmul.f32 %v310_v42, %v862_v0  ;;  %v318_v49 = vstv %s883_s15  ;;  %s923_s24 = sld [smem:[#allocation2 + $0x281]] }
  0x26   : > { %v326_v50 = vstv %s891_s9  ;;  %v266_v51 = vrot.slane %v264_v43, 3  ;;  %v290_v52 = vadd.f32 %v672_v45, %v282_v44  ;;  %v319_v53 = vmul.f32 %v318_v49, %v862_v0  ;;  %s927_s25 = sld [smem:[#allocation2 + $0x282]] }
  0x27   : > { %v327_v54 = vmul.f32 %v326_v50, %v862_v0  ;;  %v678_v55 = vrot.slane %v311_v48, 9  ;;  %v341_v56 = vstv %s899_s19  ;;  %v344_v57 = vstv %s903_s20  ;;  %s931_s26 = sld [smem:[#allocation2 + $0x283]] }
  0x28   : > { %v267_v58 = vsel %vm229_vm0, %v264_v43, %v266_v51  ;;  %v298_v59 = vadd.f32 %v674_v47, %v290_v52  ;;  %v680_v60 = vrot.slane %v319_v53, 10  ;;  %s934_s27 = sld [smem:[#allocation2 + $0x300]]  ;;  %v342_v63 = vmul.f32 %v341_v56, %v862_v0 }
  0x29   : > { %v682_v61 = vrot.slane %v327_v54, 11  ;;  %667 = vst.msk [vmem:[%s896_s18 + $0x1] ss:$8 sm:$0x3] %vm885_vm1, %v267_v58  ;;  %v316_v62 = vadd.f32 %v678_v55, %v308_v46  ;;  %v345_v1 = vmul.f32 %v344_v57, %v862_v0  ;;  %v352_v2 = vstv %s907_s21  ;;  %s942_s28 = sld [smem:[#allocation2 + $0x301]] }
  0x2a   : > { %v300_v3 = vrot.slane %v298_v59, 3  ;;  %v353_v4 = vmul.f32 %v352_v2, %v862_v0  ;;  %v360_v5 = vstv %s915_s22  ;;  %v375_v6 = vstv %s918_s23  ;;  %s947_s29 = sld [smem:[#allocation2 + $0x302]] }
  0x2b   : > { %v324_v7 = vadd.f32 %v680_v60, %v316_v62  ;;  %v686_v8 = vrot.slane %v345_v1, 9  ;;  %v361_v9 = vmul.f32 %v360_v5, %v862_v0  ;;  %v376_v10 = vmul.f32 %v375_v6, %v862_v0  ;;  %s951_s30 = sld [smem:[#allocation2 + $0x303]] }
  0x2c   : > { %v301_v11 = vsel %vm229_vm0, %v298_v59, %v300_v3  ;;  %v688_v12 = vrot.slane %v353_v4, 10  ;;  %v378_v13 = vstv %s923_s24  ;;  %v386_v14 = vstv %s927_s25  ;;  %s956_s3 = sld [smem:[#allocation2 + $0x380]] }
  0x2d   : > { %675 = vst.msk [vmem:[%s896_s18 + $0x2] ss:$8 sm:$0x3] %vm885_vm1, %v301_v11  ;;  %v332_v15 = vadd.f32 %v682_v61, %v324_v7  ;;  %v350_v16 = vadd.f32 %v686_v8, %v342_v63  ;;  %v690_v17 = vrot.slane %v361_v9, 11  ;;  %v379_v18 = vmul.f32 %v378_v13, %v862_v0  ;;  %s962_s4 = sld [smem:[#allocation2 + $0x381]] }
  0x2e   : > { %v387_v19 = vmul.f32 %v386_v14, %v862_v0  ;;  %v394_v20 = vstv %s931_s26  ;;  %v409_v21 = vstv %s934_s27  ;;  %s967_s5 = sld [smem:[#allocation2 + $0x382]] }
  0x2f   : > { %v334_v22 = vrot.slane %v332_v15, 3  ;;  %v358_v23 = vadd.f32 %v688_v12, %v350_v16  ;;  %v694_v24 = vrot.slane %v379_v18, 9  ;;  %v395_v25 = vmul.f32 %v394_v20, %v862_v0  ;;  %s970_s6 = sld [smem:[#allocation2 + $0x383]] }
  0x30   : > { %v696_v27 = vrot.slane %v387_v19, 10  ;;  %v410_v28 = vmul.f32 %v409_v21, %v862_v0  ;;  %v412_v29 = vstv %s942_s28  ;;  %v420_v30 = vstv %s947_s29  ;;  %s975_s7 = sld [smem:[#allocation2 + $0x400]] }
  0x31   : > { %v335_v31 = vsel %vm229_vm0, %v332_v15, %v334_v22  ;;  %v366_v32 = vadd.f32 %v690_v17, %v358_v23  ;;  %v384_v33 = vadd.f32 %v694_v24, %v376_v10  ;;  %v698_v34 = vrot.slane %v395_v25, 11  ;;  %s978_s8 = sld [smem:[#allocation2 + $0x401]] }
  0x32   : > { %683 = vst.msk [vmem:[%s896_s18 + $0x3] ss:$8 sm:$0x3] %vm885_vm1, %v335_v31  ;;  %v413_v35 = vmul.f32 %v412_v29, %v862_v0  ;;  %v421_v36 = vmul.f32 %v420_v30, %v862_v0  ;;  %v428_v37 = vstv %s951_s30  ;;  %v443_v38 = vstv %s956_s3  ;;  %s987_s12 = sld [smem:[#allocation2 + $0x402]] }
  0x33   : > { %v368_v39 = vrot.slane %v366_v32, 3  ;;  %v392_v40 = vadd.f32 %v696_v27, %v384_v33  ;;  %v429_v41 = vmul.f32 %v428_v37, %v862_v0  ;;  %v444_v42 = vmul.f32 %v443_v38, %v862_v0  ;;  %s991_s14 = sld [smem:[#allocation2 + $0x403]] }
  0x34   : > { %v702_v43 = vrot.slane %v413_v35, 9  ;;  %v704_v44 = vrot.slane %v421_v36, 10  ;;  %v446_v45 = vstv %s962_s4  ;;  %v454_v46 = vstv %s967_s5  ;;  %s995_s15 = sld [smem:[#allocation2 + $0x480]] }
  0x35   : > { %v369_v47 = vsel %vm229_vm0, %v366_v32, %v368_v39  ;;  %v400_v48 = vadd.f32 %v698_v34, %v392_v40  ;;  %v706_v49 = vrot.slane %v429_v41, 11  ;;  %v447_v50 = vmul.f32 %v446_v45, %v862_v0  ;;  %s999_s9 = sld [smem:[#allocation2 + $0x481]] }
  0x36   : > { %691 = vst.msk [vmem:[%s896_s18 + $0x4] ss:$8 sm:$0x3] %vm885_vm1, %v369_v47  ;;  %v418_v51 = vadd.f32 %v702_v43, %v410_v28  ;;  %v455_v52 = vmul.f32 %v454_v46, %v862_v0  ;;  %v462_v53 = vstv %s970_s6  ;;  %v477_v54 = vstv %s975_s7  ;;  %s1007_s16 = sld [smem:[#allocation2 + $0x482]] }
  0x37   : > { %v402_v55 = vrot.slane %v400_v48, 3  ;;  %v710_v56 = vrot.slane %v447_v50, 9  ;;  %v463_v57 = vmul.f32 %v462_v53, %v862_v0  ;;  %v478_v58 = vmul.f32 %v477_v54, %v862_v0  ;;  %s1011_s17 = sld [smem:[#allocation2 + $0x483]] }
  0x38   : > { %v426_v59 = vadd.f32 %v704_v44, %v418_v51  ;;  %v712_v60 = vrot.slane %v455_v52, 10  ;;  %v480_v61 = vstv %s978_s8  ;;  %v488_v62 = vstv %s987_s12 }
  0x39   : > { %v403_v63 = vsel %vm229_vm0, %v400_v48, %v402_v55  ;;  %v452_v1 = vadd.f32 %v710_v56, %v444_v42  ;;  %v714_v2 = vrot.slane %v463_v57, 11  ;;  %v481_v3 = vmul.f32 %v480_v61, %v862_v0 }
  0x3a   : > { %699 = vst.msk [vmem:[%s896_s18 + $0x5] ss:$8 sm:$0x3] %vm885_vm1, %v403_v63  ;;  %v434_v4 = vadd.f32 %v706_v49, %v426_v59  ;;  %v489_v5 = vmul.f32 %v488_v62, %v862_v0  ;;  %v496_v6 = vstv %s991_s14  ;;  %v511_v7 = vstv %s995_s15 }
  0x3b   : > { %v460_v8 = vadd.f32 %v712_v60, %v452_v1  ;;  %v718_v9 = vrot.slane %v481_v3, 9  ;;  %v497_v10 = vmul.f32 %v496_v6, %v862_v0  ;;  %v512_v11 = vmul.f32 %v511_v7, %v862_v0 }
  0x3c   : > { %v436_v12 = vrot.slane %v434_v4, 3  ;;  %v720_v13 = vrot.slane %v489_v5, 10  ;;  %v514_v14 = vstv %s999_s9  ;;  %v522_v15 = vstv %s1007_s16 }
  0x3d   : > { %v468_v16 = vadd.f32 %v714_v2, %v460_v8  ;;  %v486_v17 = vadd.f32 %v718_v9, %v478_v58  ;;  %v722_v18 = vrot.slane %v497_v10, 11  ;;  %v515_v19 = vmul.f32 %v514_v14, %v862_v0 }
  0x3e   : > { %v437_v20 = vsel %vm229_vm0, %v434_v4, %v436_v12  ;;  %v523_v21 = vmul.f32 %v522_v15, %v862_v0  ;;  %v530_v22 = vstv %s1011_s17 }
  0x3f   : > { %707 = vst.msk [vmem:[%s896_s18 + $0x6] ss:$8 sm:$0x3] %vm885_vm1, %v437_v20  ;;  %v470_v23 = vrot.slane %v468_v16, 3  ;;  %v494_v24 = vadd.f32 %v720_v13, %v486_v17  ;;  %v726_v25 = vrot.slane %v515_v19, 9  ;;  %v531_v27 = vmul.f32 %v530_v22, %v862_v0 }
  0x40   : > { %v728_v28 = vrot.slane %v523_v21, 10 }
  0x41   : > { %v471_v29 = vsel %vm229_vm0, %v468_v16, %v470_v23  ;;  %v502_v30 = vadd.f32 %v722_v18, %v494_v24  ;;  %v520_v31 = vadd.f32 %v726_v25, %v512_v11  ;;  %v730_v32 = vrot.slane %v531_v27, 11 }
  0x42   : > { %715 = vst.msk [vmem:[%s896_s18 + $0x7] ss:$8 sm:$0x3] %vm885_vm1, %v471_v29 }
  0x43   : > { %v504_v33 = vrot.slane %v502_v30, 3  ;;  %v528_v34 = vadd.f32 %v728_v28, %v520_v31 }
  0x45   : > { %v505_v35 = vsel %vm229_vm0, %v502_v30, %v504_v33  ;;  %v536_v36 = vadd.f32 %v730_v32, %v528_v34 }
  0x46   : > { %723 = vst.msk [vmem:[%s896_s18 + $0x10] ss:$8 sm:$0x3] %vm885_vm1, %v505_v35 }
  0x47   : > { %v538_v37 = vrot.slane %v536_v36, 3 }
  0x49   : > { %v539_v0 = vsel %vm229_vm0, %v536_v36, %v538_v37 }
  0x4a   : > { %731 = vst.msk [vmem:[%s896_s18 + $0x11] ss:$8 sm:$0x3] %vm885_vm1, %v539_v0 }
  0x4b PF: > { %s13_s11 = sadd.s32 1, %s814_s11   ;;  %s1061_s9 = smov %s810_s10 }
  0x4c   : > { %p10_p8 = scmp.ge.s32.totalorder %s13_s11, 4   ;;  %s1062_s10 = smov %s1064_s13 }
  0x4e   :  { %12 = sbr.rel (!%p10_p8) target bundleno = 2 (0x2), region = 72 }
  0x53   :  { %574 = vsyncpa [#allocation3], 1 }
  0x54   :  { %576 = vsyncpa [#allocation3 + $0x1], 1 }

</bundles_post_ra>
